<compile_context>
chip_gen: v7x
topology: tpu7x:2x2x1
jax: 0.10.0
libtpu: 0.0.40
codegen_flags: <defaults>
</compile_context>

<pallas_src>
import functools

import jax
import jax.numpy as jnp
from jax.experimental import pallas as pl
from jax.experimental.pallas import tpu as pltpu

C1, C2, C3, C_OUT = 64, 128, 64, 2
LANES = 128
FC_ROW = 192        # row offset of the fc weight inside the matrix slab
FC_PAD = 8          # fc output channels padded 2 -> 8 (one sublane group)


def ode_cnn_kernel(x_ref, vec_ref, mat_ref, o_ref):
    """One batch tile: x^T (1, TM) -> out^T (8, TM); only rows 0..1 are valid."""
    x = x_ref[...]                                   # (1, TM)   f32
    vecs = vec_ref[...]                              # (128, 8)  f32 small params

    w1 = vecs[0:C1, 0:1]                             # (64, 1)  conv1 weight (K=1)
    b1 = vecs[0:C1, 1:2]                             # (64, 1)
    b2 = vecs[0:C2, 2:3]                             # (128, 1)
    b3 = vecs[0:C3, 3:4]                             # (64, 1)
    bf = vecs[0:FC_PAD, 4:5]                         # (8, 1)   rows 2.. are 0

    # conv1 (1 -> 64, k=1): K=1 contraction is a rank-1 outer product; do it on
    # the VPU as a broadcast multiply instead of wasting an MXU pass.
    h1 = jnp.maximum(w1 * x + b1, 0.0)               # (64, TM)  f32

    # conv2 (64 -> 128): bf16 operands, f32 accumulation on the MXU.
    w2 = mat_ref[0:C2, 0:C1]                         # (128, 64) bf16
    h2 = jnp.dot(w2, h1.astype(jnp.bfloat16),
                 preferred_element_type=jnp.float32)
    h2 = jnp.maximum(h2 + b2, 0.0)                   # (128, TM) f32

    # conv3 (128 -> 64)
    w3 = mat_ref[C2:C2 + C3, 0:C2]                   # (64, 128) bf16
    h3 = jnp.dot(w3, h2.astype(jnp.bfloat16),
                 preferred_element_type=jnp.float32)
    h3 = jnp.maximum(h3 + b3, 0.0)                   # (64, TM)  f32

    # fc1 (64 -> 2), stored padded to 8 output rows so the output block is a
    # fully tile-aligned (8, TM) lane-dense slab (unmasked vst + tiny DMA).
    wf = mat_ref[FC_ROW:FC_ROW + FC_PAD, 0:C3]       # (8, 64)   bf16
    out = jnp.dot(wf, h3.astype(jnp.bfloat16),
                  preferred_element_type=jnp.float32) + bf       # (8, TM)

    o_ref[...] = out.astype(o_ref.dtype)


def _round_up(n, m):
    return ((n + m - 1) // m) * m


@functools.partial(jax.jit, static_argnames=("tm",))
def ode_cnn_forward(x, vecs, mats, *, tm=512):
    """x: (B, 1) f32; vecs/mats: packed params from pack_params(); -> (B, 2)."""
    B = x.shape[0]
    # Batch lives on the lane axis -> tile must be a multiple of 128.
    tm_eff = min(_round_up(tm, LANES), _round_up(B, LANES))
    b_pad = _round_up(B, tm_eff)
    x_t = jnp.pad(x[:, 0], (0, b_pad - B)).reshape(1, b_pad)   # (1, b_pad)
    grid = (b_pad // tm_eff,)

    out_t = pl.pallas_call(
        ode_cnn_kernel,
        out_shape=jax.ShapeDtypeStruct((FC_PAD, b_pad), jnp.float32),
        grid=grid,
        in_specs=[
            pl.BlockSpec((1, tm_eff), lambda i: (0, i)),       # batch-tiled x^T
            pl.BlockSpec((C2, 8), lambda i: (0, 0)),           # resident vec slab
            pl.BlockSpec((256, LANES), lambda i: (0, 0)),      # resident mat slab
        ],
        out_specs=pl.BlockSpec((FC_PAD, tm_eff), lambda i: (0, i)),
        compiler_params=pltpu.CompilerParams(
            dimension_semantics=("parallel",)),
    )(x_t, vecs, mats)
    return out_t[:C_OUT, :B].T


def init_params(key):
    """Deterministic synthetic parameters in PyTorch layout.

    Conv1d weight: (out, in, 1), bias: (out,).  Linear weight: (out, in),
    bias: (out,).  Uniform(-1/sqrt(fan_in), 1/sqrt(fan_in)) like PyTorch.
    """
    ks = jax.random.split(key, 8)

    def u(k, shape, fan_in):
        bound = 1.0 / jnp.sqrt(float(fan_in))
        return jax.random.uniform(k, shape, jnp.float32, -bound, bound)

    w1 = u(ks[0], (C1, 1, 1), 1)
    b1 = u(ks[1], (C1,), 1)
    w2 = u(ks[2], (C2, C1, 1), C1)
    b2 = u(ks[3], (C2,), C1)
    w3 = u(ks[4], (C3, C2, 1), C2)
    b3 = u(ks[5], (C3,), C2)
    wf = u(ks[6], (C_OUT, C3), C3)
    bf = u(ks[7], (C_OUT,), C3)
    return (w1, b1, w2, b2, w3, b3, wf, bf)


def pack_params(params):
    """Pack the 8 PyTorch-layout tensors into two slabs (channel on sublanes).

    vecs: (128, 8) f32    col 0: conv1 w, 1: conv1 b, 2: conv2 b, 3: conv3 b,
                          4: fc b (zero padding elsewhere).
    mats: (256, 128) bf16 rows   0:128 -> conv2 W (out, in)
                          rows 128:192 -> conv3 W (out, in)
                          rows 192:194 -> fc    W (out, in), rest zero.
    """
    w1, b1, w2, b2, w3, b3, wf, bf = params
    vecs = jnp.zeros((C2, 8), jnp.float32)
    vecs = vecs.at[0:C1, 0].set(w1[:, 0, 0])
    vecs = vecs.at[0:C1, 1].set(b1)
    vecs = vecs.at[0:C2, 2].set(b2)
    vecs = vecs.at[0:C3, 3].set(b3)
    vecs = vecs.at[0:C_OUT, 4].set(bf)

    mats = jnp.zeros((256, LANES), jnp.float32)
    mats = mats.at[0:C2, 0:C1].set(w2[:, :, 0])                 # (128, 64)
    mats = mats.at[C2:C2 + C3, 0:C2].set(w3[:, :, 0])           # (64, 128)
    mats = mats.at[FC_ROW:FC_ROW + C_OUT, 0:C3].set(wf)         # (2, 64)
    return vecs, mats.astype(jnp.bfloat16)


def reference_forward(x, params):
    """Pure-JAX f32 reference implementing the exact PyTorch math."""
    w1, b1, w2, b2, w3, b3, wf, bf = params
    h = jnp.maximum(x @ w1[:, :, 0].T + b1, 0.0)
    h = jnp.maximum(h @ w2[:, :, 0].T + b2, 0.0)
    h = jnp.maximum(h @ w3[:, :, 0].T + b3, 0.0)
    return h @ wf.T + bf


if __name__ == "__main__":
    key = jax.random.PRNGKey(0)
    kx, kp, kx2 = jax.random.split(key, 3)

    params = init_params(kp)
    vecs, mats = pack_params(params)

    # Small latency-path test (single 128-wide tile, grid == 1).
    B = 8
    x = jax.random.uniform(kx, (B, 1), jnp.float32)   # MinMaxScaler-style [0,1]
    out = jax.block_until_ready(ode_cnn_forward(x, vecs, mats))
    ref = reference_forward(x, params)
    assert out.shape == (B, C_OUT), out.shape
    # bf16 MXU operands with f32 accumulation -> loosened tolerance.
    assert jnp.allclose(out, ref, rtol=2e-2, atol=2e-2), (out, ref)

    # Non-tile-aligned batch to exercise the batch grid + tail padding path.
    B2 = 520
    x2 = jax.random.uniform(kx2, (B2, 1), jnp.float32)
    out2 = jax.block_until_ready(ode_cnn_forward(x2, vecs, mats, tm=256))
    ref2 = reference_forward(x2, params)
    assert out2.shape == (B2, C_OUT), out2.shape
    assert jnp.allclose(out2, ref2, rtol=2e-2, atol=2e-2), (out2, ref2)

    print("KERNEL_OK")
</pallas_src>

<mosaic_0001>
module attributes {stable_mosaic.version = 11 : i64} {
  func.func @ode_cnn_kernel(%arg0: i32, %arg1: memref<1x128xf32, #tpu.memory_space<vmem>>, %arg2: memref<128x8xf32, #tpu.memory_space<vmem>>, %arg3: memref<256x128xbf16, #tpu.memory_space<vmem>>, %arg4: memref<8x128xf32, #tpu.memory_space<vmem>>) attributes {dimension_semantics = [#tpu.dimension_semantics<parallel>], iteration_bounds = array<i64: 1>, scalar_prefetch = 0 : i64, scratch_operands = 0 : i64, tpu.core_type = #tpu.core_type<tc>, window_params = [{transform_indices = @transform_0, window_bounds = array<i64: 1, 128>}, {pipeline_mode = #tpu.pipeline_mode<synchronous>, transform_indices = @transform_1, window_bounds = array<i64: 128, 8>}, {pipeline_mode = #tpu.pipeline_mode<synchronous>, transform_indices = @transform_2, window_bounds = array<i64: 256, 128>}, {transform_indices = @transform_3, window_bounds = array<i64: 8, 128>}]} {
    %c0 = arith.constant 0 : index
    %c0_0 = arith.constant 0 : index
    %0 = vector.load %arg1[%c0, %c0_0] : memref<1x128xf32, #tpu.memory_space<vmem>>, vector<1x128xf32>
    %c0_1 = arith.constant 0 : index
    %c0_2 = arith.constant 0 : index
    %1 = vector.load %arg2[%c0_1, %c0_2] : memref<128x8xf32, #tpu.memory_space<vmem>>, vector<128x8xf32>
    %2 = vector.extract_strided_slice %1 {offsets = [0, 0], sizes = [64, 1], strides = [1, 1]} : vector<128x8xf32> to vector<64x1xf32>
    %3 = vector.extract_strided_slice %1 {offsets = [0, 1], sizes = [64, 1], strides = [1, 1]} : vector<128x8xf32> to vector<64x1xf32>
    %4 = vector.extract_strided_slice %1 {offsets = [0, 2], sizes = [128, 1], strides = [1, 1]} : vector<128x8xf32> to vector<128x1xf32>
    %5 = vector.extract_strided_slice %1 {offsets = [0, 3], sizes = [64, 1], strides = [1, 1]} : vector<128x8xf32> to vector<64x1xf32>
    %6 = vector.extract_strided_slice %1 {offsets = [0, 4], sizes = [8, 1], strides = [1, 1]} : vector<128x8xf32> to vector<8x1xf32>
    %7 = vector.broadcast %2 : vector<64x1xf32> to vector<64x128xf32>
    %8 = vector.broadcast %0 : vector<1x128xf32> to vector<64x128xf32>
    %9 = arith.mulf %7, %8 : vector<64x128xf32>
    %10 = vector.broadcast %3 : vector<64x1xf32> to vector<64x128xf32>
    %11 = arith.addf %9, %10 : vector<64x128xf32>
    %cst = arith.constant 0.000000e+00 : f32
    %12 = vector.broadcast %cst : f32 to vector<64x128xf32>
    %13 = arith.maximumf %11, %12 : vector<64x128xf32>
    %c0_3 = arith.constant 0 : index
    %c0_4 = arith.constant 0 : index
    %14 = vector.load %arg3[%c0_3, %c0_4] : memref<256x128xbf16, #tpu.memory_space<vmem>>, vector<128x64xbf16>
    %15 = arith.truncf %13 : vector<64x128xf32> to vector<64x128xbf16>
    %cst_5 = arith.constant dense<0.000000e+00> : vector<128x128xf32>
    %16 = tpu.matmul %14, %15, %cst_5 {dimension_numbers = #tpu.dot_dimension_numbers<[1], [0], [0], [1], [0, 0, 1, 1], [], []>} : vector<128x64xbf16>, vector<64x128xbf16>, vector<128x128xf32> -> vector<128x128xf32>
    %17 = vector.broadcast %4 : vector<128x1xf32> to vector<128x128xf32>
    %18 = arith.addf %16, %17 : vector<128x128xf32>
    %cst_6 = arith.constant 0.000000e+00 : f32
    %19 = vector.broadcast %cst_6 : f32 to vector<128x128xf32>
    %20 = arith.maximumf %18, %19 : vector<128x128xf32>
    %c128 = arith.constant 128 : index
    %c0_7 = arith.constant 0 : index
    %21 = vector.load %arg3[%c128, %c0_7] : memref<256x128xbf16, #tpu.memory_space<vmem>>, vector<64x128xbf16>
    %22 = arith.truncf %20 : vector<128x128xf32> to vector<128x128xbf16>
    %cst_8 = arith.constant dense<0.000000e+00> : vector<64x128xf32>
    %23 = tpu.matmul %21, %22, %cst_8 {dimension_numbers = #tpu.dot_dimension_numbers<[1], [0], [0], [1], [0, 0, 1, 1], [], []>} : vector<64x128xbf16>, vector<128x128xbf16>, vector<64x128xf32> -> vector<64x128xf32>
    %24 = vector.broadcast %5 : vector<64x1xf32> to vector<64x128xf32>
    %25 = arith.addf %23, %24 : vector<64x128xf32>
    %cst_9 = arith.constant 0.000000e+00 : f32
    %26 = vector.broadcast %cst_9 : f32 to vector<64x128xf32>
    %27 = arith.maximumf %25, %26 : vector<64x128xf32>
    %c192 = arith.constant 192 : index
    %c0_10 = arith.constant 0 : index
    %28 = vector.load %arg3[%c192, %c0_10] : memref<256x128xbf16, #tpu.memory_space<vmem>>, vector<8x64xbf16>
    %29 = arith.truncf %27 : vector<64x128xf32> to vector<64x128xbf16>
    %cst_11 = arith.constant dense<0.000000e+00> : vector<8x128xf32>
    %30 = tpu.matmul %28, %29, %cst_11 {dimension_numbers = #tpu.dot_dimension_numbers<[1], [0], [0], [1], [0, 0, 1, 1], [], []>} : vector<8x64xbf16>, vector<64x128xbf16>, vector<8x128xf32> -> vector<8x128xf32>
    %31 = vector.broadcast %6 : vector<8x1xf32> to vector<8x128xf32>
    %32 = arith.addf %30, %31 : vector<8x128xf32>
    %c0_12 = arith.constant 0 : index
    %c0_13 = arith.constant 0 : index
    %33 = vector.load %arg4[%c0_12, %c0_13] : memref<8x128xf32, #tpu.memory_space<vmem>>, vector<8x128xf32>
    tpu.vector_store %arg4[%c0_12, %c0_13], %32 {strides = array<i32>} : memref<8x128xf32, #tpu.memory_space<vmem>>, vector<8x128xf32>,
    return
  }
  func.func @transform_0(%arg0: i32) -> (i32, i32) {
    %c0_i32 = arith.constant 0 : i32
    %c0_i32_0 = arith.constant 0 : i32
    return %c0_i32, %arg0 : i32, i32
  }
  func.func @transform_1(%arg0: i32) -> (i32, i32) {
    %c0_i32 = arith.constant 0 : i32
    %c0_i32_0 = arith.constant 0 : i32
    %c0_i32_1 = arith.constant 0 : i32
    return %c0_i32, %c0_i32_0 : i32, i32
  }
  func.func @transform_2(%arg0: i32) -> (i32, i32) {
    %c0_i32 = arith.constant 0 : i32
    %c0_i32_0 = arith.constant 0 : i32
    %c0_i32_1 = arith.constant 0 : i32
    return %c0_i32, %c0_i32_0 : i32, i32
  }
  func.func @transform_3(%arg0: i32) -> (i32, i32) {
    %c0_i32 = arith.constant 0 : i32
    %c0_i32_0 = arith.constant 0 : i32
    return %c0_i32, %arg0 : i32, i32
  }
}

</mosaic_0001>

<bundles_post_ra>
// kernel: ode_cnn_forward.1
= control target key start
LH: loop header
LB: loop body
LE: loop exit
PB: predicated region body
PF: predicated region fallthrough
CT: control target
= control target key end

     0   :  { %v752_v0 = vmov 1   ;;  %v753_v4 = vmov 0   ;;  %vm266_vm0 = vcmask 523264   ;;  %v754_v11 = vmov 2   ;;  %s930_s1 = inlined_call_operand.vmem [shape: f32[128,8], index: 1, kind: input, shape index: {}]   ;;  %s931_s2 = inlined_call_operand.vmem [shape: bf16[256,128], index: 2, kind: input, shape index: {}]   ;;  %s932_s0 = inlined_call_operand.vmem [shape: f32[1,128], index: 0, kind: input, shape index: {}]   ;;  %s933_s3 = inlined_call_operand.vmem [shape: f32[8,128], index: 3, kind: output, shape index: {}]  }
   0x1   :  { %726 = vset.pattern.permute.xlu0 %v752_v0  ;;  %724 = vset.pattern.permute.xlu1 %v752_v0  ;;  %v782_v1 = vld [vmem:[%s930_s1 + $0x10] sm:$0xff]  ;;  %v787_v2 = vld [vmem:[%s930_s1] sm:$0xff]  ;;  %v794_v3 = vld [vmem:[%s930_s1 + $0x8] sm:$0xff]  ;;  %vm757_vm1 = vmmov 0  }
   0x2   :  { %95 = vperm.xlu0 %726, %v782_v1   ;;  %87 = vperm.xlu1 %724, %v787_v2   ;;  %v801_v5 = vld [vmem:[%s930_s1 + $0x18] sm:$0xff]  ;;  %v810_v6 = vld [vmem:[%s930_s1 + $0x28] sm:$0xff]  ;;  %v815_v7 = vld [vmem:[%s930_s1 + $0x20] sm:$0xff] }
   0x3   :  { %v821_v8 = vld [vmem:[%s930_s1 + $0x30] sm:$0xff]  ;;  %v831_v9 = vld [vmem:[%s930_s1 + $0x38] sm:$0xff]  ;;  %v740_v10 = vld [vmem:[%s931_s2] sm:$0xff]  }
   0x4   :  { %665 = vmatprep.mubr.msk.bf16.mxu0 %vm266_vm0, %v740_v10  ;;  %v24_v12 = vld [vmem:[%s930_s1 + $0x40] sm:$0xff]  ;;  %v26_v13 = vld [vmem:[%s930_s1 + $0x50] sm:$0xff]  ;;  %v25_v14 = vld [vmem:[%s930_s1 + $0x48] sm:$0xff] }
   0x5   :  { %v28_v15 = vld [vmem:[%s930_s1 + $0x60] sm:$0xff]  ;;  %v27_v16 = vld [vmem:[%s930_s1 + $0x58] sm:$0xff]  ;;  %v30_v17 = vld [vmem:[%s930_s1 + $0x70] sm:$0xff] }
   0x6   :  { %727 = vset.pattern.permute.xlu0 %v753_v4  ;;  %91 = vperm.xlu1 %724, %v794_v3   ;;  %v29_v18 = vld [vmem:[%s930_s1 + $0x68] sm:$0xff]  ;;  %v31_v19 = vld [vmem:[%s930_s1 + $0x78] sm:$0xff]  ;;  %v606_v22 = vld [vmem:[%s932_s0] ss:$0 sm:$0xff] }
   0x7   :  { %34 = vperm.xlu0 %727, %v787_v2   ;;  %v742_v10 = vld [vmem:[%s931_s2 + $0x10] sm:$0xff]  }
   0xa   :  { %725 = vset.pattern.permute.xlu1 %v753_v4 }
   0xb   :  { %39 = vperm.xlu0 %727, %v794_v3   ;;  %49 = vperm.xlu1 %725, %v801_v5  }
   0xf   :  { %44 = vperm.xlu0 %727, %v782_v1   ;;  %728 = vset.pattern.permute.xlu1 %v752_v0 }
  0x10   :  { %99 = vperm.xlu1 %728, %v801_v5  }
  0x13   :  { %59 = vperm.xlu0 %727, %v810_v6  }
  0x14   :  { %729 = vset.pattern.permute.xlu1 %v753_v4 }
  0x15   :  { %54 = vperm.xlu1 %729, %v815_v7  }
  0x17   :  { %64 = vperm.xlu0 %727, %v821_v8  }
  0x19   :  { %730 = vset.pattern.permute.xlu1 %v752_v0 }
  0x1a   :  { %103 = vperm.xlu1 %730, %v815_v7  }
  0x1b   :  { %732 = vset.pattern.permute.xlu0 %v752_v0 }
  0x1c   :  { %111 = vperm.xlu0 %732, %v821_v8  }
  0x1e   :  { %107 = vperm.xlu1 %730, %v810_v6  }
  0x20   :  { %735 = vset.pattern.permute.xlu0 %v754_v11 }
  0x21   :  { %159 = vperm.xlu0 %735, %v794_v3  }
  0x22   :  { %731 = vset.pattern.permute.xlu1 %v753_v4  ;;  %v741_v4 = vld [vmem:[%s931_s2 + $0x8] sm:$0xff]  }
  0x23   :  { %69 = vperm.xlu1 %731, %v831_v9  }
  0x25   :  { %171 = vperm.xlu0 %735, %v815_v7  }
  0x27   :  { %733 = vset.pattern.permute.xlu1 %v752_v0 }
  0x28   :  { %115 = vperm.xlu1 %733, %v831_v9  }
  0x29   :  { %179 = vperm.xlu0 %735, %v821_v8  }
  0x2c   :  { %734 = vset.pattern.permute.xlu1 %v754_v11  ;;  %v743_v11 = vld [vmem:[%s931_s2 + $0x18] sm:$0xff]  }
  0x2d   :  { %155 = vperm.xlu1 %734, %v787_v2   ;;  %188 = vperm.xlu0 %735, %v24_v12   ;;  %v744_v12 = vld [vmem:[%s931_s2 + $0x20] sm:$0xff]  }
  0x31   :  { %163 = vperm.xlu1 %734, %v782_v1   ;;  %198 = vperm.xlu0 %735, %v26_v13   ;;  %v745_v13 = vld [vmem:[%s931_s2 + $0x28] sm:$0xff]  }
  0x35   :  { %167 = vperm.xlu1 %734, %v801_v5   ;;  %208 = vperm.xlu0 %735, %v28_v15   ;;  %v747_v15 = vld [vmem:[%s931_s2 + $0x38] sm:$0xff]  }
  0x39   :  { %175 = vperm.xlu1 %734, %v810_v6   ;;  %218 = vperm.xlu0 %735, %v30_v17   ;;  %v755_v17 = vmov 3  }
  0x3d   :  { %183 = vperm.xlu1 %734, %v831_v9   ;;  %736 = vset.pattern.permute.xlu0 %v755_v17 }
  0x3e   :  { %421 = vperm.xlu0 %736, %v787_v2  }
  0x41   :  { %193 = vperm.xlu1 %734, %v25_v14   ;;  %v746_v14 = vld [vmem:[%s931_s2 + $0x30] sm:$0xff]  }
  0x42   :  { %433 = vperm.xlu0 %736, %v801_v5  }
  0x45   :  { %203 = vperm.xlu1 %734, %v27_v16   ;;  %v748_v16 = vld [vmem:[%s931_s2 + $0x40] sm:$0xff]  }
  0x46   :  { %697 = vmatprep.mubr.bf16.mxu1 %v748_v16  ;;  %441 = vperm.xlu0 %736, %v810_v6  }
  0x49   :  { %213 = vperm.xlu1 %734, %v29_v18  }
  0x4a   :  { %449 = vperm.xlu0 %736, %v831_v9  }
  0x4d   :  { %223 = vperm.xlu1 %734, %v31_v19  }
  0x51   :  { %737 = vset.pattern.permute.xlu1 %v755_v17 }
  0x52   :  { %425 = vperm.xlu1 %737, %v794_v3  }
  0x56   :  { %429 = vperm.xlu1 %737, %v782_v1  }
  0x5a   :  { %437 = vperm.xlu1 %737, %v815_v7  }
  0x5e   :  { %445 = vperm.xlu1 %737, %v821_v8  }
  0x81   :  { %v88_v20 = vpop.permute.xlu1 %87  ;;  %v96_v21 = vpop.permute.xlu0 %95 }
  0x85   :  { %v92_v23 = vpop.permute.xlu1 %91 }
  0x86   :  { %v35_v24 = vpop.permute.xlu0 %34 }
  0x87   :  { %v78_v25 = vmul.f32 %v606_v22, %v35_v24 }
  0x89   :  { %v118_v28 = vadd.f32 %v88_v20, %v78_v25 }
  0x8a   :  { %v40_v26 = vpop.permute.xlu0 %39  ;;  %v50_v27 = vpop.permute.xlu1 %49 }
  0x8b   :  { %v79_v29 = vmul.f32 %v606_v22, %v40_v26  ;;  %v81_v31 = vmul.f32 %v606_v22, %v50_v27  ;;  %v126_v33 = vmax.f32 %v118_v28, 0.0 }
  0x8d   :  { %v119_v30 = vadd.f32 %v92_v23, %v79_v29 }
  0x8e   :  { %v45_v32 = vpop.permute.xlu0 %44 }
  0x8f   :  { %v127_v34 = vmax.f32 %v119_v30, 0.0  ;;  %v80_v35 = vmul.f32 %v606_v22, %v45_v32  ;;  %v100_v36 = vpop.permute.xlu1 %99 }
  0x90   :  { %v121_v37 = vadd.f32 %v100_v36, %v81_v31 }
  0x91   :  { %v120_v38 = vadd.f32 %v96_v21, %v80_v35  ;;  %v150_v39 = vpack.c.bf16 %v127_v34, %v126_v33 }
  0x92   :  { %v129_v40 = vmax.f32 %v121_v37, 0.0  ;;  %v60_v44 = vpop.permute.xlu0 %59 }
  0x93   :  { %v128_v41 = vmax.f32 %v120_v38, 0.0  ;;  %657 = vmatprep.subr.bf16.mxu0 %v150_v39  ;;  %v83_v47 = vmul.f32 %v606_v22, %v60_v44 }
  0x94   :  { %v55_v42 = vpop.permute.xlu1 %54  ;;  %658 = vmatpush3.bf16.msra.mxu0 %v150_v39 }
  0x95   :  { %v151_v43 = vpack.c.bf16 %v129_v40, %v128_v41  ;;  %v82_v46 = vmul.f32 %v606_v22, %v55_v42 }
  0x96   :  { %v65_v49 = vpop.permute.xlu0 %64 }
  0x97   :  { %659 = vmatprep.subr.bf16.mxu0 %v151_v43  ;;  %v84_v57 = vmul.f32 %v606_v22, %v65_v49 }
  0x98   :  { %660 = vmatpush3.bf16.msra.mxu0 %v151_v43 }
  0x99   :  { %v104_v45 = vpop.permute.xlu1 %103 }
  0x9a   :  { %v122_v48 = vadd.f32 %v104_v45, %v82_v46 }
  0x9b   :  { %v112_v56 = vpop.permute.xlu0 %111 }
  0x9c   :  { %v130_v52 = vmax.f32 %v122_v48, 0.0  ;;  %v124_v58 = vadd.f32 %v112_v56, %v84_v57 }
  0x9d   :  { %v108_v50 = vpop.permute.xlu1 %107 }
  0x9e   :  { %v123_v51 = vadd.f32 %v108_v50, %v83_v47  ;;  %v132_v62 = vmax.f32 %v124_v58, 0.0 }
  0xa0   :  { %v131_v53 = vmax.f32 %v123_v51, 0.0  ;;  %v160_v20 = vpop.permute.xlu0 %159 }
  0xa2   :  { %v152_v54 = vpack.c.bf16 %v131_v53, %v130_v52  ;;  %v70_v55 = vpop.permute.xlu1 %69 }
  0xa3   :  { %v85_v59 = vmul.f32 %v606_v22, %v70_v55 }
  0xa4   :  { %661 = vmatprep.subr.bf16.mxu0 %v152_v54  ;;  %v172_v22 = vpop.permute.xlu0 %171 }
  0xa5   :  { %662 = vmatpush3.bf16.msra.mxu0 %v152_v54 }
  0xa7   :  { %v116_v60 = vpop.permute.xlu1 %115 }
  0xa8   :  { %v125_v61 = vadd.f32 %v116_v60, %v85_v59  ;;  %v180_v24 = vpop.permute.xlu0 %179 }
  0xaa   :  { %v133_v63 = vmax.f32 %v125_v61, 0.0 }
  0xac   :  { %v153_v0 = vpack.c.bf16 %v133_v63, %v132_v62  ;;  %v156_v18 = vpop.permute.xlu1 %155  ;;  %v189_v30 = vpop.permute.xlu0 %188 }
  0xae   :  { %663 = vmatprep.subr.bf16.mxu0 %v153_v0 }
  0xaf   :  { %664 = vmatpush3.bf16.msra.mxu0 %v153_v0 }
  0xb0   :  { %v164_v19 = vpop.permute.xlu1 %163  ;;  %v199_v42 = vpop.permute.xlu0 %198 }
  0xb2   :  { %666 = vmatmul.mubr.msk.bf16.vlgmr.msra.gmra.mrb[0].mxu0 %vm266_vm0, %v741_v4 }
  0xb3   :  { %669 = vmatprep.mubr.msk.bf16.mxu0 %vm266_vm0, %v742_v10 }
  0xb4   :  { %v168_v21 = vpop.permute.xlu1 %167  ;;  %v209_v54 = vpop.permute.xlu0 %208 }
  0xb8   :  { %v176_v23 = vpop.permute.xlu1 %175  ;;  %v219_v10 = vpop.permute.xlu0 %218 }
  0xba   :  { %670 = vmatmul.mubr.msk.bf16.gmra.mrb[4].mxu0 %vm266_vm0, %v743_v11 }
  0xbb   :  { %673 = vmatprep.mubr.msk.bf16.mxu0 %vm266_vm0, %v744_v12 }
  0xbc   :  { %v184_v26 = vpop.permute.xlu1 %183 }
  0xc0   :  { %v194_v33 = vpop.permute.xlu1 %193 }
  0xc2   :  { %674 = vmatmul.mubr.msk.bf16.gmra.mrb[8].mxu0 %vm266_vm0, %v745_v13 }
  0xc3   :  { %677 = vmatprep.mubr.msk.bf16.mxu0 %vm266_vm0, %v746_v14 }
  0xc4   :  { %v204_v46 = vpop.permute.xlu1 %203 }
  0xc8   :  { %v214_v59 = vpop.permute.xlu1 %213 }
  0xca   :  { %678 = vmatmul.mubr.msk.bf16.gmra.mrb[12].mxu0 %vm266_vm0, %v747_v15 }
  0xcc   :  { %v224_v15 = vpop.permute.xlu1 %223 }
 0x185   :  { %v667_v3 = vpop.f32.mrb[0].mxu0 }
 0x186   :  { %v334_v25 = vadd.f32 %v667_v3, %v164_v19  ;;  %v325_v5 = vpop.f32.mrb[1].mxu0 }
 0x187   :  { %v326_v1 = vadd.f32 %v325_v5, %v156_v18  ;;  %v668_v27 = vpop.f32.mrb[2].mxu0  ;;  %v749_v5 = vld [vmem:[%s931_s2 + $0x48] sm:$0xff]  }
 0x188   :  { %v337_v6 = vadd.f32 %v668_v27, %v168_v21  ;;  %v328_v28 = vpop.f32.mrb[3].mxu0  ;;  %v390_v29 = vmax.f32 %v334_v25, 0.0  ;;  %v756_v27 = vmov 0.0  }
 0x189   :  { %v329_v7 = vadd.f32 %v328_v28, %v160_v20  ;;  %v388_v8 = vmax.f32 %v326_v1, 0.0  ;;  %v751_v1 = vld [vmem:[%s931_s2 + $0x58] sm:$0xff]   ;;  %705 = vmatprep.subr.bf16.mxu0 %v756_v27  ;;  %713 = vmatprep.mubr.msk.bf16.mxu0 %vm757_vm1, %v756_v27  ;;  %v426_v28 = vpop.permute.xlu1 %425 }
 0x18a   :  { %v391_v9 = vmax.f32 %v337_v6, 0.0  ;;  %v758_v6 = vmov 4  }
 0x18b   :  { %v389_v31 = vmax.f32 %v329_v7, 0.0  ;;  %738 = vset.pattern.permute.xlu1 %v758_v6  ;;  %739 = vset.pattern.permute.xlu0 %v758_v6  ;;  %v422_v7 = vpop.permute.xlu0 %421 }
 0x18c   :  { %v413_v32 = vpack.c.bf16 %v391_v9, %v390_v29  ;;  %555 = vperm.xlu1 %738, %v787_v2  }
 0x18d   :  { %v671_v34 = vpop.f32.mrb[4].mxu0  ;;  %v412_v35 = vpack.c.bf16 %v389_v31, %v388_v8  ;;  %v430_v29 = vpop.permute.xlu1 %429 }
 0x18e   :  { %v350_v36 = vadd.f32 %v671_v34, %v180_v24  ;;  %v341_v37 = vpop.f32.mrb[5].mxu0 }
 0x18f   :  { %v342_v38 = vadd.f32 %v341_v37, %v172_v22  ;;  %v672_v39 = vpop.f32.mrb[6].mxu0  ;;  %681 = vmatprep.subr.bf16.mxu1 %v412_v35  ;;  %v434_v9 = vpop.permute.xlu0 %433 }
 0x190   :  { %v353_v40 = vadd.f32 %v672_v39, %v184_v26  ;;  %v344_v41 = vpop.f32.mrb[7].mxu0  ;;  %682 = vmatpush3.bf16.msra.mxu1 %v412_v35  ;;  %v394_v44 = vmax.f32 %v350_v36, 0.0  ;;  %v750_v26 = vld [vmem:[%s931_s2 + $0x50] sm:$0xff]  }
 0x191   :  { %v345_v43 = vadd.f32 %v344_v41, %v176_v23  ;;  %683 = vmatprep.subr.bf16.mxu1 %v413_v32  ;;  %v392_v47 = vmax.f32 %v342_v38, 0.0 }
 0x192   :  { %v395_v45 = vmax.f32 %v353_v40, 0.0 }
 0x193   :  { %v393_v48 = vmax.f32 %v345_v43, 0.0  ;;  %v442_v37 = vpop.permute.xlu0 %441 }
 0x194   :  { %v415_v49 = vpack.c.bf16 %v395_v45, %v394_v44  ;;  %684 = vmatpush3.bf16.msra.mxu1 %v413_v32  ;;  %v438_v32 = vpop.permute.xlu1 %437 }
 0x195   :  { %v414_v50 = vpack.c.bf16 %v393_v48, %v392_v47  ;;  %v675_v51 = vpop.f32.mrb[8].mxu0 }
 0x196   :  { %v366_v52 = vadd.f32 %v675_v51, %v199_v42  ;;  %v357_v53 = vpop.f32.mrb[9].mxu0 }
 0x197   :  { %v358_v55 = vadd.f32 %v357_v53, %v189_v30  ;;  %v676_v56 = vpop.f32.mrb[10].mxu0  ;;  %685 = vmatprep.subr.bf16.mxu1 %v414_v50  ;;  %v450_v48 = vpop.permute.xlu0 %449 }
 0x198   :  { %v369_v57 = vadd.f32 %v676_v56, %v204_v46  ;;  %v360_v58 = vpop.f32.mrb[11].mxu0  ;;  %686 = vmatpush3.bf16.msra.mxu1 %v414_v50  ;;  %v398_v61 = vmax.f32 %v366_v52, 0.0  ;;  %v446_v2 = vpop.permute.xlu1 %445 }
 0x199   :  { %v361_v60 = vadd.f32 %v360_v58, %v194_v33  ;;  %687 = vmatprep.subr.bf16.mxu1 %v415_v49  ;;  %v396_v63 = vmax.f32 %v358_v55, 0.0 }
 0x19a   :  { %v399_v62 = vmax.f32 %v369_v57, 0.0 }
 0x19b   :  { %v397_v0 = vmax.f32 %v361_v60, 0.0  ;;  %v549_v60 = vld [vmem:[%s931_s2 + $0x60] sm:$0xf] }
 0x19c   :  { %v417_v4 = vpack.c.bf16 %v399_v62, %v398_v61  ;;  %688 = vmatpush3.bf16.msra.mxu1 %v415_v49 }
 0x19d   :  { %v416_v11 = vpack.c.bf16 %v397_v0, %v396_v63  ;;  %v679_v12 = vpop.f32.mrb[12].mxu0 }
 0x19e   :  { %v382_v13 = vadd.f32 %v679_v12, %v219_v10  ;;  %v373_v14 = vpop.f32.mrb[13].mxu0 }
 0x19f   :  { %v374_v16 = vadd.f32 %v373_v14, %v209_v54  ;;  %v680_v17 = vpop.f32.mrb[14].mxu0  ;;  %689 = vmatprep.subr.bf16.mxu1 %v416_v11 }
 0x1a0   :  { %v385_v18 = vadd.f32 %v680_v17, %v224_v15  ;;  %v376_v19 = vpop.f32.mrb[15].mxu0  ;;  %690 = vmatpush3.bf16.msra.mxu1 %v416_v11  ;;  %v402_v21 = vmax.f32 %v382_v13, 0.0 }
 0x1a1   :  { %v377_v20 = vadd.f32 %v376_v19, %v214_v59  ;;  %691 = vmatprep.subr.bf16.mxu1 %v417_v4  ;;  %v400_v23 = vmax.f32 %v374_v16, 0.0 }
 0x1a2   :  { %v403_v22 = vmax.f32 %v385_v18, 0.0 }
 0x1a3   :  { %v401_v24 = vmax.f32 %v377_v20, 0.0 }
 0x1a4   :  { %v419_v3 = vpack.c.bf16 %v403_v22, %v402_v21  ;;  %692 = vmatpush3.bf16.msra.mxu1 %v417_v4 }
 0x1a5   :  { %v418_v25 = vpack.c.bf16 %v401_v24, %v400_v23 }
 0x1a7   :  { %693 = vmatprep.subr.bf16.mxu1 %v418_v25 }
 0x1a8   :  { %694 = vmatpush3.bf16.msra.mxu1 %v418_v25 }
 0x1a9   :  { %695 = vmatprep.subr.bf16.mxu1 %v419_v3 }
 0x1ac   :  { %696 = vmatpush3.bf16.msra.mxu1 %v419_v3 }
 0x1af   :  { %698 = vmatmul.mubr.bf16.vlgmr.msra.gmra.mrb[0].mxu1 %v749_v5 }
 0x1b0   :  { %701 = vmatprep.mubr.bf16.mxu1 %v750_v26 }
 0x1b7   :  { %702 = vmatmul.mubr.bf16.gmra.mrb[4].mxu1 %v751_v1 }
 0x20b   :  { %v556_v61 = vpop.permute.xlu1 %555 }
 0x282   :  { %v699_v30 = vpop.f32.mrb[0].mxu1 }
 0x283   :  { %v519_v8 = vadd.f32 %v699_v30, %v430_v29  ;;  %v510_v31 = vpop.f32.mrb[1].mxu1 }
 0x284   :  { %v511_v33 = vadd.f32 %v510_v31, %v422_v7  ;;  %v700_v34 = vpop.f32.mrb[2].mxu1 }
 0x285   :  { %v522_v35 = vadd.f32 %v700_v34, %v434_v9  ;;  %v513_v36 = vpop.f32.mrb[3].mxu1  ;;  %v543_v39 = vmax.f32 %v519_v8, 0.0 }
 0x286   :  { %v514_v38 = vadd.f32 %v513_v36, %v426_v28  ;;  %v541_v41 = vmax.f32 %v511_v33, 0.0 }
 0x287   :  { %v544_v40 = vmax.f32 %v522_v35, 0.0 }
 0x288   :  { %v542_v42 = vmax.f32 %v514_v38, 0.0 }
 0x289   :  { %v551_v43 = vpack.c.bf16 %v544_v40, %v543_v39 }
 0x28a   :  { %v550_v44 = vpack.c.bf16 %v542_v42, %v541_v41  ;;  %v703_v45 = vpop.f32.mrb[4].mxu1 }
 0x28b   :  { %v535_v46 = vadd.f32 %v703_v45, %v446_v2  ;;  %v526_v47 = vpop.f32.mrb[5].mxu1 }
 0x28c   :  { %v527_v49 = vadd.f32 %v526_v47, %v438_v32  ;;  %v704_v50 = vpop.f32.mrb[6].mxu1  ;;  %706 = vmatpush3.bf16.msra.mxu0 %v550_v44 }
 0x28d   :  { %v538_v51 = vadd.f32 %v704_v50, %v450_v48  ;;  %v529_v52 = vpop.f32.mrb[7].mxu1  ;;  %707 = vmatprep.subr.bf16.mxu0 %v756_v27  ;;  %v547_v54 = vmax.f32 %v535_v46, 0.0 }
 0x28e   :  { %v530_v53 = vadd.f32 %v529_v52, %v442_v37  ;;  %v545_v56 = vmax.f32 %v527_v49, 0.0 }
 0x28f   :  { %v548_v55 = vmax.f32 %v538_v51, 0.0 }
 0x290   :  { %v546_v57 = vmax.f32 %v530_v53, 0.0  ;;  %708 = vmatpush3.bf16.msra.mxu0 %v551_v43 }
 0x291   :  { %v553_v58 = vpack.c.bf16 %v548_v55, %v547_v54  ;;  %709 = vmatprep.subr.bf16.mxu0 %v756_v27 }
 0x292   :  { %v552_v59 = vpack.c.bf16 %v546_v57, %v545_v56 }
 0x294   :  { %710 = vmatpush3.bf16.msra.mxu0 %v552_v59 }
 0x295   :  { %711 = vmatprep.subr.bf16.mxu0 %v756_v27 }
 0x298   :  { %712 = vmatpush3.bf16.msra.mxu0 %v553_v58 }
 0x29b   :  { %714 = vmatmul.mubr.msk.bf16.vlgmr.msra.gmra.mrb[16].mxu0 %vm266_vm0, %v549_v60 }
 0x36e   :  { %v595_v62 = vpop.f32.mrb[16].mxu0 }
 0x36f   :  { %v715_v63 = vpop.f32.mrb[17].mxu0  ;;  %v596_v0 = vadd.f32 %v595_v62, %v556_v61 }
 0x370   :  { %v598_v4 = vpop.f32.mrb[18].mxu0 }
 0x371   :  { %601 = vst [vmem:[%s933_s3] sm:$0xff] %v596_v0  ;;  %v716_v10 = vpop.f32.mrb[19].mxu0 }

</bundles_post_ra>
